<compile_context>
chip_gen: v7x
topology: tpu7x:2x2x1
jax: 0.10.0
libtpu: 0.0.40
codegen_flags: <defaults>
</compile_context>

<pallas_src>
import functools

import jax
import jax.numpy as jnp
from jax import lax
from jax.experimental import pallas as pl
from jax.experimental.pallas import tpu as pltpu

EPS = 1e-5
NEG_SLOPE = 0.1

# Scoped-VMEM limit requested from Mosaic (safe on every generation: v7x has
# 64 MiB physical, v5e/v6e have 128 MiB) and the slice of it we size blocks to.
VMEM_LIMIT_BYTES = 32 * 1024 * 1024
VMEM_BLOCK_BUDGET = 24 * 1024 * 1024


def _round_up(x, m):
    return (x + m - 1) // m * m


# --------------------------- Pass 1 -------------------------------------------
# grid = (N, m_tiles, k_tiles), semantics ("parallel", "parallel", "arbitrary").
# K-tiled bf16 MXU matmul into an f32 VMEM accumulator; on the last K step the
# conv tile is cached to HBM in bf16 and this tile's per-channel sum / sumsq
# partials are emitted into their own output block (no cross-iteration
# accumulator -> fully parallel over images and row tiles).


def _conv_stats_kernel(p_ref, w_ref, conv_ref, sum_ref, sq_ref, acc_ref):
    k = pl.program_id(2)

    @pl.when(k == 0)
    def _():
        acc_ref[...] = jnp.zeros_like(acc_ref)

    acc_ref[...] += jnp.dot(p_ref[...], w_ref[...],
                            preferred_element_type=jnp.float32)

    @pl.when(k == pl.num_programs(2) - 1)
    def _():
        conv = acc_ref[...]                              # f32 (tm1, ocp)
        conv_ref[...] = conv.astype(conv_ref.dtype)      # bf16 intermediate
        s = jnp.sum(conv, axis=0, keepdims=True)         # (1, ocp) f32
        q = jnp.sum(conv * conv, axis=0, keepdims=True)
        # Stats blocks are (8, ocp) to keep the (8,128) tiling constraint happy;
        # sublane-broadcast the row and read row 0 back in the JAX fold.
        sum_ref[...] = jnp.broadcast_to(s, sum_ref.shape)
        sq_ref[...] = jnp.broadcast_to(q, sq_ref.shape)


# --------------------------- Pass 2 -------------------------------------------
# Memory-bound epilogue: y = conv*scale + shift, LeakyReLU, and the tile is
# stored already transposed to (OC, rows) so NCHW output needs no XLA transpose.


def _bn_act_kernel(conv_ref, scale_ref, shift_ref, o_ref):
    y = conv_ref[...].astype(jnp.float32) * scale_ref[...] + shift_ref[...]
    y = jnp.where(y > 0, y, NEG_SLOPE * y)
    o_ref[...] = y.T.astype(o_ref.dtype)                 # (tm2, ocp) -> (ocp, tm2)


# --------------------------- Wrapper ------------------------------------------


def _im2col(x, kh, kw, stride, pad):
    """(N, C, H, W) -> (N, OH*OW, C*KH*KW) patches (dtype preserved), plus OH, OW."""
    n, c, h, w = x.shape
    xp = jnp.pad(x, ((0, 0), (0, 0), (pad, pad), (pad, pad)))
    oh = (h + 2 * pad - kh) // stride + 1
    ow = (w + 2 * pad - kw) // stride + 1
    cols = []
    for i in range(kh):
        for j in range(kw):
            cols.append(xp[:, :, i:i + stride * oh:stride, j:j + stride * ow:stride])
    # (N, C, KH*KW, OH, OW) -> (N, OH, OW, C, KH*KW): C major / kernel-idx minor,
    # matching torch's (OC, IC, KH, KW).reshape(OC, -1) weight layout.
    patches = jnp.stack(cols, axis=2)
    patches = patches.transpose(0, 3, 4, 1, 2).reshape(n, oh * ow, c * kh * kw)
    return patches, oh, ow


def _pick_tiles(ohw, kp, ocp, block_m):
    # Contraction tile (kp is always a multiple of 128).
    tk = next(c for c in (512, 256, 128) if kp % c == 0)
    # Pass-1 VMEM per M-row: 2x patches (bf16) + 2x conv-out (bf16) + f32 acc.
    # Fixed: resident weight block (double-buffered by default) + stats blocks.
    fixed = 2 * tk * ocp * 2 + 4 * 8 * ocp * 4
    per_row = 2 * tk * 2 + 2 * ocp * 2 + ocp * 4
    cap = max(128, (VMEM_BLOCK_BUDGET - fixed) // per_row)
    tm1 = max(128, min(block_m, cap)) // 128 * 128
    if tm1 >= 512:
        tm1 = tm1 // 256 * 256            # prefer 256-aligned feeds (v6e/v7x MXU)
    tm1 = min(tm1, _round_up(ohw, 128))   # don't blow past one (padded) image
    # Pass-2 is memory-bound: ~12*ocp bytes per row (bf16 in x2 + f32 out x2).
    p2_cap = max(tm1, (VMEM_BLOCK_BUDGET // (12 * ocp)) // tm1 * tm1)
    tm2 = max(tm1, min(p2_cap, (2048 // tm1) * tm1, _round_up(ohw, tm1)))
    mp_img = _round_up(ohw, tm2)          # multiple of tm2 and of tm1
    return tk, tm1, tm2, mp_img


@functools.partial(jax.jit, static_argnames=("stride", "padding", "block_m"))
def cnn_block(x, conv_w, gamma, beta, *, stride=1, padding=1, block_m=512):
    """x: (N, C, H, W) f32; conv_w: (OC, IC, KH, KW); gamma/beta: (OC,) -> (N, OC, OH, OW) f32."""
    n, c, h, w = x.shape
    oc, ic, kh, kw = conv_w.shape
    assert ic == c

    # im2col directly in bf16 (the MXU operand dtype): no f32 blow-up + cast pass.
    patches, oh, ow = _im2col(x.astype(jnp.bfloat16), kh, kw, stride, padding)
    ohw = oh * ow
    k = c * kh * kw

    kp = _round_up(k, 128)
    ocp = _round_up(oc, 128)
    tk, tm1, tm2, mp_img = _pick_tiles(ohw, kp, ocp, block_m)
    num_k = kp // tk
    m1_tiles = mp_img // tm1
    m2_tiles = mp_img // tm2

    # Zero padding: padded rows / K columns / channels contribute exactly zero to
    # the conv and to the stats partials; the real count n*ohw is used below.
    patches_p = jnp.pad(patches, ((0, 0), (0, mp_img - ohw), (0, kp - k)))
    w2d = jnp.pad(conv_w.reshape(oc, k).T.astype(jnp.bfloat16),
                  ((0, kp - k), (0, ocp - oc)))

    # ---- Pass 1: bf16 conv cache + per-(image, row-tile) channel-stat partials ----
    conv_bf16, part_sum, part_sq = pl.pallas_call(
        _conv_stats_kernel,
        out_shape=(
            jax.ShapeDtypeStruct((n, mp_img, ocp), jnp.bfloat16),
            jax.ShapeDtypeStruct((n, m1_tiles, 8, ocp), jnp.float32),
            jax.ShapeDtypeStruct((n, m1_tiles, 8, ocp), jnp.float32),
        ),
        grid=(n, m1_tiles, num_k),
        in_specs=[
            pl.BlockSpec((None, tm1, tk), lambda b, i, kk: (b, i, kk)),
            pl.BlockSpec((tk, ocp), lambda b, i, kk: (kk, 0)),   # weight resident
        ],
        out_specs=(
            pl.BlockSpec((None, tm1, ocp), lambda b, i, kk: (b, i, 0)),
            pl.BlockSpec((None, None, 8, ocp), lambda b, i, kk: (b, i, 0, 0)),
            pl.BlockSpec((None, None, 8, ocp), lambda b, i, kk: (b, i, 0, 0)),
        ),
        scratch_shapes=[pltpu.VMEM((tm1, ocp), jnp.float32)],
        compiler_params=pltpu.CompilerParams(
            dimension_semantics=("parallel", "parallel", "arbitrary"),
            vmem_limit_bytes=VMEM_LIMIT_BYTES),
    )(patches_p, w2d)

    # ---- Tiny O(OC) fold in plain JAX: reduce partials, BN + affine -> scale/shift.
    count = float(n * ohw)                               # true row count (no padding)
    ch_sum = part_sum[:, :, 0, :].sum(axis=(0, 1))       # (ocp,) f32
    ch_sq = part_sq[:, :, 0, :].sum(axis=(0, 1))
    mean = ch_sum / count
    var = jnp.maximum(ch_sq / count - mean * mean, 0.0)  # biased var (BN training mode)
    inv_std = lax.rsqrt(var + EPS)
    gamma_p = jnp.pad(gamma.astype(jnp.float32), (0, ocp - oc))
    beta_p = jnp.pad(beta.astype(jnp.float32), (0, ocp - oc))
    scale = (gamma_p * inv_std).reshape(1, ocp)
    shift = (beta_p - mean * gamma_p * inv_std).reshape(1, ocp)

    # ---- Pass 2: normalize + affine + LeakyReLU, written channel-major -----------
    out_cm = pl.pallas_call(
        _bn_act_kernel,
        out_shape=jax.ShapeDtypeStruct((n, ocp, mp_img), jnp.float32),
        grid=(n, m2_tiles),
        in_specs=[
            pl.BlockSpec((None, tm2, ocp), lambda b, i: (b, i, 0)),
            pl.BlockSpec((1, ocp), lambda b, i: (0, 0)),
            pl.BlockSpec((1, ocp), lambda b, i: (0, 0)),
        ],
        out_specs=pl.BlockSpec((None, ocp, tm2), lambda b, i: (b, 0, i)),
        compiler_params=pltpu.CompilerParams(
            dimension_semantics=("parallel", "parallel"),
            vmem_limit_bytes=VMEM_LIMIT_BYTES),
    )(conv_bf16, scale, shift)

    # (N, OCP, MP_img) -> slice real channels/rows -> (N, OC, OH, OW). Pure
    # slice + contiguous reshape: no full-output transpose pass.
    return out_cm[:, :oc, :ohw].reshape(n, oc, oh, ow)


# --------------------------- Reference (pure JAX, f32) -------------------------


def _reference(x, conv_w, gamma, beta, *, stride=1, padding=1):
    conv = lax.conv_general_dilated(
        x, conv_w, window_strides=(stride, stride),
        padding=((padding, padding), (padding, padding)),
        dimension_numbers=("NCHW", "OIHW", "NCHW"))
    mean = conv.mean(axis=(0, 2, 3), keepdims=True)
    var = conv.var(axis=(0, 2, 3), keepdims=True)        # biased, as in BN training
    y = (conv - mean) * lax.rsqrt(var + EPS) * gamma.reshape(1, -1, 1, 1) \
        + beta.reshape(1, -1, 1, 1)
    return jnp.where(y > 0, y, NEG_SLOPE * y)


if __name__ == "__main__":
    key = jax.random.PRNGKey(0)
    k_x, k_w = jax.random.split(key, 2)

    N, IC, H, W = 2, 4, 16, 16
    OC, KH, KW = 8, 3, 3  # Conv2d(4, 8, kernel_size=3, stride=1, padding=1)

    x = jax.random.normal(k_x, (N, IC, H, W), dtype=jnp.float32)
    conv_w = jax.random.normal(k_w, (OC, IC, KH, KW), dtype=jnp.float32) * 0.1
    # BatchNorm2d default init: weight=1, bias=0 (deterministic).
    gamma = jnp.ones((OC,), dtype=jnp.float32)
    beta = jnp.zeros((OC,), dtype=jnp.float32)

    out = cnn_block(x, conv_w, gamma, beta, stride=1, padding=1)
    out = jax.block_until_ready(out)

    ref = _reference(x, conv_w, gamma, beta, stride=1, padding=1)
    assert out.shape == (N, OC, H, W), out.shape
    # bf16 MXU operands and bf16 conv intermediate (f32 stats/accumulation) vs the
    # f32 reference -> relaxed tolerance.
    assert jnp.allclose(out, ref, atol=5e-2, rtol=5e-2), \
        float(jnp.max(jnp.abs(out - ref)))

    print("KERNEL_OK")
</pallas_src>

<mosaic_0001>
module attributes {stable_mosaic.version = 11 : i64} {
  func.func @_conv_stats_kernel(%arg0: i32, %arg1: i32, %arg2: i32, %arg3: memref<1x256x128xbf16, #tpu.memory_space<vmem>>, %arg4: memref<128x128xbf16, #tpu.memory_space<vmem>>, %arg5: memref<1x256x128xbf16, #tpu.memory_space<vmem>>, %arg6: memref<1x1x8x128xf32, #tpu.memory_space<vmem>>, %arg7: memref<1x1x8x128xf32, #tpu.memory_space<vmem>>, %arg8: memref<256x128xf32, #tpu.memory_space<vmem>>) attributes {dimension_semantics = [#tpu.dimension_semantics<parallel>, #tpu.dimension_semantics<parallel>, #tpu.dimension_semantics<arbitrary>], iteration_bounds = array<i64: 2, 1, 1>, scalar_prefetch = 0 : i64, scratch_operands = 1 : i64, tpu.core_type = #tpu.core_type<tc>, window_params = [{transform_indices = @transform_0, window_bounds = array<i64: 1, 256, 128>}, {transform_indices = @transform_1, window_bounds = array<i64: 128, 128>}, {transform_indices = @transform_2, window_bounds = array<i64: 1, 256, 128>}, {transform_indices = @transform_3, window_bounds = array<i64: 1, 1, 8, 128>}, {transform_indices = @transform_4, window_bounds = array<i64: 1, 1, 8, 128>}]} {
    %c0_i32 = arith.constant 0 : i32
    %0 = arith.cmpi eq, %arg2, %c0_i32 : i32
    %1 = arith.extui %0 : i1 to i32
    %c0_i32_0 = arith.constant 0 : i32
    %2 = arith.cmpi ne, %1, %c0_i32_0 : i32
    scf.if %2 {
      %cst_11 = arith.constant 0.000000e+00 : f32
      %13 = vector.broadcast %cst_11 : f32 to vector<256x128xf32>
      %c0_12 = arith.constant 0 : index
      %c0_13 = arith.constant 0 : index
      %14 = vector.load %arg8[%c0_12, %c0_13] : memref<256x128xf32, #tpu.memory_space<vmem>>, vector<256x128xf32>
      tpu.vector_store %arg8[%c0_12, %c0_13], %13 {strides = array<i32>} : memref<256x128xf32, #tpu.memory_space<vmem>>, vector<256x128xf32>,
    } else {
    }
    %c0 = arith.constant 0 : index
    %c0_1 = arith.constant 0 : index
    %3 = vector.load %arg8[%c0, %c0_1] : memref<256x128xf32, #tpu.memory_space<vmem>>, vector<256x128xf32>
    %c0_2 = arith.constant 0 : index
    %c0_3 = arith.constant 0 : index
    %c0_4 = arith.constant 0 : index
    %4 = vector.load %arg3[%c0_2, %c0_3, %c0_4] : memref<1x256x128xbf16, #tpu.memory_space<vmem>>, vector<1x256x128xbf16>
    %5 = vector.shape_cast %4 : vector<1x256x128xbf16> to vector<256x128xbf16>
    %c0_5 = arith.constant 0 : index
    %c0_6 = arith.constant 0 : index
    %6 = vector.load %arg4[%c0_5, %c0_6] : memref<128x128xbf16, #tpu.memory_space<vmem>>, vector<128x128xbf16>
    %cst = arith.constant dense<0.000000e+00> : vector<256x128xf32>
    %7 = tpu.matmul %5, %6, %cst {dimension_numbers = #tpu.dot_dimension_numbers<[1], [0], [0], [1], [0, 0, 1, 1], [], []>} : vector<256x128xbf16>, vector<128x128xbf16>, vector<256x128xf32> -> vector<256x128xf32>
    %8 = arith.addf %3, %7 : vector<256x128xf32>
    %c0_7 = arith.constant 0 : index
    %c0_8 = arith.constant 0 : index
    %9 = vector.load %arg8[%c0_7, %c0_8] : memref<256x128xf32, #tpu.memory_space<vmem>>, vector<256x128xf32>
    tpu.vector_store %arg8[%c0_7, %c0_8], %8 {strides = array<i32>} : memref<256x128xf32, #tpu.memory_space<vmem>>, vector<256x128xf32>,
    %c0_i32_9 = arith.constant 0 : i32
    %10 = arith.cmpi eq, %arg2, %c0_i32_9 : i32
    %11 = arith.extui %10 : i1 to i32
    %c0_i32_10 = arith.constant 0 : i32
    %12 = arith.cmpi ne, %11, %c0_i32_10 : i32
    scf.if %12 {
      %c0_11 = arith.constant 0 : index
      %c0_12 = arith.constant 0 : index
      %13 = vector.load %arg8[%c0_11, %c0_12] : memref<256x128xf32, #tpu.memory_space<vmem>>, vector<256x128xf32>
      %14 = arith.truncf %13 : vector<256x128xf32> to vector<256x128xbf16>
      %c0_13 = arith.constant 0 : index
      %c0_14 = arith.constant 0 : index
      %c0_15 = arith.constant 0 : index
      %15 = vector.load %arg5[%c0_13, %c0_14, %c0_15] : memref<1x256x128xbf16, #tpu.memory_space<vmem>>, vector<1x256x128xbf16>
      %16 = vector.shape_cast %15 : vector<1x256x128xbf16> to vector<256x128xbf16>
      %17 = vector.shape_cast %14 : vector<256x128xbf16> to vector<1x256x128xbf16>
      tpu.vector_store %arg5[%c0_13, %c0_14, %c0_15], %17 {strides = array<i32>} : memref<1x256x128xbf16, #tpu.memory_space<vmem>>, vector<1x256x128xbf16>,
      %cst_16 = arith.constant dense<0.000000e+00> : vector<128xf32>
      %18 = vector.multi_reduction <add>, %13, %cst_16 [0] : vector<256x128xf32> to vector<128xf32>
      %19 = vector.shape_cast %18 : vector<128xf32> to vector<1x128xf32>
      %20 = arith.mulf %13, %13 : vector<256x128xf32>
      %cst_17 = arith.constant dense<0.000000e+00> : vector<128xf32>
      %21 = vector.multi_reduction <add>, %20, %cst_17 [0] : vector<256x128xf32> to vector<128xf32>
      %22 = vector.shape_cast %21 : vector<128xf32> to vector<1x128xf32>
      %23 = vector.shape_cast %19 : vector<1x128xf32> to vector<1x128xf32>
      %24 = vector.broadcast %23 : vector<1x128xf32> to vector<8x128xf32>
      %c0_18 = arith.constant 0 : index
      %c0_19 = arith.constant 0 : index
      %c0_20 = arith.constant 0 : index
      %c0_21 = arith.constant 0 : index
      %25 = vector.load %arg6[%c0_18, %c0_19, %c0_20, %c0_21] : memref<1x1x8x128xf32, #tpu.memory_space<vmem>>, vector<1x1x8x128xf32>
      %26 = vector.shape_cast %25 : vector<1x1x8x128xf32> to vector<8x128xf32>
      %27 = vector.shape_cast %24 : vector<8x128xf32> to vector<1x1x8x128xf32>
      tpu.vector_store %arg6[%c0_18, %c0_19, %c0_20, %c0_21], %27 {strides = array<i32>} : memref<1x1x8x128xf32, #tpu.memory_space<vmem>>, vector<1x1x8x128xf32>,
      %28 = vector.shape_cast %22 : vector<1x128xf32> to vector<1x128xf32>
      %29 = vector.broadcast %28 : vector<1x128xf32> to vector<8x128xf32>
      %c0_22 = arith.constant 0 : index
      %c0_23 = arith.constant 0 : index
      %c0_24 = arith.constant 0 : index
      %c0_25 = arith.constant 0 : index
      %30 = vector.load %arg7[%c0_22, %c0_23, %c0_24, %c0_25] : memref<1x1x8x128xf32, #tpu.memory_space<vmem>>, vector<1x1x8x128xf32>
      %31 = vector.shape_cast %30 : vector<1x1x8x128xf32> to vector<8x128xf32>
      %32 = vector.shape_cast %29 : vector<8x128xf32> to vector<1x1x8x128xf32>
      tpu.vector_store %arg7[%c0_22, %c0_23, %c0_24, %c0_25], %32 {strides = array<i32>} : memref<1x1x8x128xf32, #tpu.memory_space<vmem>>, vector<1x1x8x128xf32>,
    } else {
    }
    return
  }
  func.func @transform_0(%arg0: i32, %arg1: i32, %arg2: i32) -> (i32, i32, i32) {
    %c0_i32 = arith.constant 0 : i32
    return %arg0, %arg1, %arg2 : i32, i32, i32
  }
  func.func @transform_1(%arg0: i32, %arg1: i32, %arg2: i32) -> (i32, i32) {
    %c0_i32 = arith.constant 0 : i32
    %c0_i32_0 = arith.constant 0 : i32
    return %arg2, %c0_i32 : i32, i32
  }
  func.func @transform_2(%arg0: i32, %arg1: i32, %arg2: i32) -> (i32, i32, i32) {
    %c0_i32 = arith.constant 0 : i32
    %c0_i32_0 = arith.constant 0 : i32
    return %arg0, %arg1, %c0_i32 : i32, i32, i32
  }
  func.func @transform_3(%arg0: i32, %arg1: i32, %arg2: i32) -> (i32, i32, i32, i32) {
    %c0_i32 = arith.constant 0 : i32
    %c0_i32_0 = arith.constant 0 : i32
    %c0_i32_1 = arith.constant 0 : i32
    return %arg0, %arg1, %c0_i32, %c0_i32_0 : i32, i32, i32, i32
  }
  func.func @transform_4(%arg0: i32, %arg1: i32, %arg2: i32) -> (i32, i32, i32, i32) {
    %c0_i32 = arith.constant 0 : i32
    %c0_i32_0 = arith.constant 0 : i32
    %c0_i32_1 = arith.constant 0 : i32
    return %arg0, %arg1, %c0_i32, %c0_i32_0 : i32, i32, i32, i32
  }
}

module attributes {stable_mosaic.version = 11 : i64} {
  func.func @_bn_act_kernel(%arg0: i32, %arg1: i32, %arg2: memref<1x256x128xbf16, #tpu.memory_space<vmem>>, %arg3: memref<1x128xf32, #tpu.memory_space<vmem>>, %arg4: memref<1x128xf32, #tpu.memory_space<vmem>>, %arg5: memref<1x128x256xf32, #tpu.memory_space<vmem>>) attributes {dimension_semantics = [#tpu.dimension_semantics<parallel>, #tpu.dimension_semantics<parallel>], iteration_bounds = array<i64: 2, 1>, scalar_prefetch = 0 : i64, scratch_operands = 0 : i64, tpu.core_type = #tpu.core_type<tc>, window_params = [{transform_indices = @transform_0, window_bounds = array<i64: 1, 256, 128>}, {pipeline_mode = #tpu.pipeline_mode<synchronous>, transform_indices = @transform_1, window_bounds = array<i64: 1, 128>}, {pipeline_mode = #tpu.pipeline_mode<synchronous>, transform_indices = @transform_2, window_bounds = array<i64: 1, 128>}, {transform_indices = @transform_3, window_bounds = array<i64: 1, 128, 256>}]} {
    %c0 = arith.constant 0 : index
    %c0_0 = arith.constant 0 : index
    %c0_1 = arith.constant 0 : index
    %0 = vector.load %arg2[%c0, %c0_0, %c0_1] : memref<1x256x128xbf16, #tpu.memory_space<vmem>>, vector<1x256x128xbf16>
    %1 = vector.shape_cast %0 : vector<1x256x128xbf16> to vector<256x128xbf16>
    %2 = arith.extf %1 : vector<256x128xbf16> to vector<256x128xf32>
    %c0_2 = arith.constant 0 : index
    %c0_3 = arith.constant 0 : index
    %3 = vector.load %arg3[%c0_2, %c0_3] : memref<1x128xf32, #tpu.memory_space<vmem>>, vector<1x128xf32>
    %4 = vector.broadcast %3 : vector<1x128xf32> to vector<256x128xf32>
    %5 = arith.mulf %2, %4 : vector<256x128xf32>
    %c0_4 = arith.constant 0 : index
    %c0_5 = arith.constant 0 : index
    %6 = vector.load %arg4[%c0_4, %c0_5] : memref<1x128xf32, #tpu.memory_space<vmem>>, vector<1x128xf32>
    %7 = vector.broadcast %6 : vector<1x128xf32> to vector<256x128xf32>
    %8 = arith.addf %5, %7 : vector<256x128xf32>
    %cst = arith.constant 0.000000e+00 : f32
    %9 = vector.broadcast %cst : f32 to vector<256x128xf32>
    %10 = arith.cmpf ogt, %8, %9 : vector<256x128xf32>
    %cst_6 = arith.constant 1.000000e-01 : f32
    %11 = vector.broadcast %cst_6 : f32 to vector<256x128xf32>
    %12 = arith.mulf %11, %8 : vector<256x128xf32>
    %13 = arith.select %10, %8, %12 : vector<256x128xi1>, vector<256x128xf32>
    %14 = tpu.transpose %13, [1, 0] : vector<256x128xf32> -> vector<128x256xf32>
    %c0_7 = arith.constant 0 : index
    %c0_8 = arith.constant 0 : index
    %c0_9 = arith.constant 0 : index
    %15 = vector.load %arg5[%c0_7, %c0_8, %c0_9] : memref<1x128x256xf32, #tpu.memory_space<vmem>>, vector<1x128x256xf32>
    %16 = vector.shape_cast %15 : vector<1x128x256xf32> to vector<128x256xf32>
    %17 = vector.shape_cast %14 : vector<128x256xf32> to vector<1x128x256xf32>
    tpu.vector_store %arg5[%c0_7, %c0_8, %c0_9], %17 {strides = array<i32>} : memref<1x128x256xf32, #tpu.memory_space<vmem>>, vector<1x128x256xf32>,
    return
  }
  func.func @transform_0(%arg0: i32, %arg1: i32) -> (i32, i32, i32) {
    %c0_i32 = arith.constant 0 : i32
    %c0_i32_0 = arith.constant 0 : i32
    return %arg0, %arg1, %c0_i32 : i32, i32, i32
  }
  func.func @transform_1(%arg0: i32, %arg1: i32) -> (i32, i32) {
    %c0_i32 = arith.constant 0 : i32
    %c0_i32_0 = arith.constant 0 : i32
    %c0_i32_1 = arith.constant 0 : i32
    return %c0_i32, %c0_i32_0 : i32, i32
  }
  func.func @transform_2(%arg0: i32, %arg1: i32) -> (i32, i32) {
    %c0_i32 = arith.constant 0 : i32
    %c0_i32_0 = arith.constant 0 : i32
    %c0_i32_1 = arith.constant 0 : i32
    return %c0_i32, %c0_i32_0 : i32, i32
  }
  func.func @transform_3(%arg0: i32, %arg1: i32) -> (i32, i32, i32) {
    %c0_i32 = arith.constant 0 : i32
    %c0_i32_0 = arith.constant 0 : i32
    return %arg0, %c0_i32, %arg1 : i32, i32, i32
  }
}

</mosaic_0001>

<bundles_post_ra>
// kernel: cnn_block.3
= control target key start
LH: loop header
LB: loop body
LE: loop exit
PB: predicated region body
PF: predicated region fallthrough
CT: control target
= control target key end

     0   :  { %s793_s12 = smov 0   ;;  %s795_s13 = smov 0   ;;  %s957_s0 = inlined_call_operand.vmem [shape: bf16[2,256,128], index: 0, kind: input, shape index: {}]   ;;  %s958_s1 = inlined_call_operand.vmem [shape: f32[1,128], index: 1, kind: input, shape index: {}]   ;;  %s959_s2 = inlined_call_operand.vmem [shape: f32[1,128], index: 2, kind: input, shape index: {}]   ;;  %s960_s3 = inlined_call_operand.vmem [shape: f32[2,128,256], index: 3, kind: output, shape index: {}]  }
   0x1   :  { %s797_s14 = smov 0  }
   0x2 LB: > { %s25_s15 = sadd.s32 1, %s767_s13  ;;  %p635_p0 = scmp.ge.s32.totalorder %s771_s14, 1  ;;  %s771_s14 = sphi %s797_s14, %s13_s14   ;;  %s767_s13 = sphi %s795_s13, %s962_s13   ;;  %s763_s12 = sphi %s793_s12, %s961_s12  }
   0x3   : > { %p27_p1 = scmp.ge.s32.totalorder %s25_s15, 2  ;;  %p158_p2 = scmp.lt.s32.totalorder %s771_s14, 3 }
   0x5   : > { %s964_s15 = smov (%p27_p1, %s25_s15), 0  ;;  %p159_p3 = pnand %p635_p0, %p158_p2 }
   0x6   : > { %p191_p4 = scmp.lt.s32.totalorder (!%p159_p3), %s763_s12, 1  ;;  %v822_v0 = vld [vmem:[%s958_s1] ss:$0 sm:$0xff] (!%p159_p3) }
   0x7   : > { %162 = sbr.rel (%p159_p3) target bundleno = 218 (0xda), region = 32  ;;  %v831_v9 = vld [vmem:[%s959_s2] ss:$0 sm:$0xff] (!%p159_p3) }
   0xe   : > { %s966_s12 = smov (!%p191_p4, %s763_s12), 1 }
   0xf   : > { %s644_s16 = sshll.u32 %s966_s12, 7  ;;  %s645_s24 = sshll.u32 %s966_s12, 8 }
  0x10   : > { %s817_s19 = scalar_lea.vmem %s957_s0, %s644_s16  ;;  %s914_s27 = scalar_lea.vmem %s960_s3, %s645_s24 }
  0x11   : > { %v717_v1 = vld [vmem:[%s817_s19 + $0x40] sm:$0xff]   ;;  %v718_v3 = vld [vmem:[%s817_s19 + $0x48] sm:$0xff]   ;;  %v719_v36 = vld [vmem:[%s817_s19 + $0x50] sm:$0xff]  }
  0x12   : > { %v647_v2 = vld [vmem:[%s817_s19] sm:$0xff]   ;;  %v680_v4 = vunpack.c.l.bf16 %v717_v1  ;;  %v681_v6 = vunpack.c.h.bf16 %v717_v1  ;;  %v710_v8 = vld [vmem:[%s817_s19 + $0x8] sm:$0xff]   ;;  %v684_v10 = vunpack.c.l.bf16 %v718_v3  ;;  %v685_v12 = vunpack.c.h.bf16 %v718_v3  ;;  %v711_v37 = vld [vmem:[%s817_s19 + $0x10] sm:$0xff]  }
  0x13   : > { %v648_v5 = vunpack.c.l.bf16 %v647_v2  ;;  %v649_v7 = vunpack.c.h.bf16 %v647_v2  ;;  %v652_v11 = vunpack.c.l.bf16 %v710_v8  ;;  %v653_v13 = vunpack.c.h.bf16 %v710_v8  ;;  %v720_v38 = vld [vmem:[%s817_s19 + $0x58] sm:$0xff]   ;;  %v713_v8 = vld [vmem:[%s817_s19 + $0x20] sm:$0xff]  }
  0x14   : > { %v297_v14 = vmul.f32 %v680_v4, %v822_v0  ;;  %v298_v16 = vmul.f32 %v681_v6, %v822_v0  ;;  %v299_v18 = vmul.f32 %v684_v10, %v822_v0  ;;  %v300_v20 = vmul.f32 %v685_v12, %v822_v0  ;;  %v712_v43 = vld [vmem:[%s817_s19 + $0x18] sm:$0xff]  }
  0x15   : > { %v281_v15 = vmul.f32 %v648_v5, %v822_v0  ;;  %v282_v17 = vmul.f32 %v649_v7, %v822_v0  ;;  %v283_v19 = vmul.f32 %v652_v11, %v822_v0  ;;  %v284_v28 = vmul.f32 %v653_v13, %v822_v0  ;;  %v721_v7 = vld [vmem:[%s817_s19 + $0x60] sm:$0xff]  }
  0x16   : > { %v336_v21 = vadd.f32 %v831_v9, %v297_v14  ;;  %v337_v23 = vadd.f32 %v831_v9, %v298_v16  ;;  %v338_v25 = vadd.f32 %v831_v9, %v299_v18  ;;  %v339_v27 = vadd.f32 %v831_v9, %v300_v20 }
  0x17   : > { %v320_v22 = vadd.f32 %v831_v9, %v281_v15  ;;  %v321_v24 = vadd.f32 %v831_v9, %v282_v17  ;;  %v322_v26 = vadd.f32 %v831_v9, %v283_v19  ;;  %v323_v42 = vadd.f32 %v831_v9, %v284_v28 }
  0x18   : > { %vm368_vm0 = vcmp.gt.f32.partialorder %v336_v21, 0.0  ;;  %v400_v29 = vmul.f32 0.1, %v336_v21  ;;  %vm369_vm2 = vcmp.gt.f32.partialorder %v337_v23, 0.0  ;;  %v401_v31 = vmul.f32 0.1, %v337_v23 }
  0x19   : > { %vm352_vm1 = vcmp.gt.f32.partialorder %v320_v22, 0.0  ;;  %v384_v30 = vmul.f32 0.1, %v320_v22  ;;  %vm353_vm3 = vcmp.gt.f32.partialorder %v321_v24, 0.0  ;;  %v385_v32 = vmul.f32 0.1, %v321_v24 }
  0x1a   : > { %v432_v33 = vsel %vm368_vm0, %v336_v21, %v400_v29  ;;  %vm370_vm4 = vcmp.gt.f32.partialorder %v338_v25, 0.0  ;;  %v402_v35 = vmul.f32 0.1, %v338_v25  ;;  %v433_v39 = vsel %vm369_vm2, %v337_v23, %v401_v31  ;;  %v714_v31 = vld [vmem:[%s817_s19 + $0x28] sm:$0xff]  }
  0x1b   : > { %v416_v34 = vsel %vm352_vm1, %v320_v22, %v384_v30  ;;  %480 = vxpose.xlu1.b32.start [1/16] %v432_v33, 128  ;;  %v417_v40 = vsel %vm353_vm3, %v321_v24, %v385_v32  ;;  %v386_v41 = vmul.f32 0.1, %v322_v26  ;;  %vm354_vm5 = vcmp.gt.f32.partialorder %v322_v26, 0.0 }
  0x1c   : > { %448 = vxpose.xlu0.b32.start [1/16] %v416_v34, 128  ;;  %v434_v44 = vsel %vm370_vm4, %v338_v25, %v402_v35  ;;  %v688_v45 = vunpack.c.l.bf16 %v719_v36  ;;  %v656_v46 = vunpack.c.l.bf16 %v711_v37  ;;  %vm371_vm6 = vcmp.gt.f32.partialorder %v339_v27, 0.0 }
  0x1d   : > { %v689_v47 = vunpack.c.h.bf16 %v719_v36  ;;  %v657_v48 = vunpack.c.h.bf16 %v711_v37  ;;  %v692_v49 = vunpack.c.l.bf16 %v720_v38  ;;  %v403_v50 = vmul.f32 0.1, %v339_v27 }
  0x1e   : > { %v301_v51 = vmul.f32 %v688_v45, %v822_v0  ;;  %v285_v52 = vmul.f32 %v656_v46, %v822_v0  ;;  %v660_v53 = vunpack.c.l.bf16 %v712_v43  ;;  %v418_v54 = vsel %vm354_vm5, %v322_v26, %v386_v41 }
  0x1f   : > { %481 = vxpose.xlu1.b32.cont [2/16] %v433_v39, 128  ;;  %v387_v55 = vmul.f32 0.1, %v323_v42  ;;  %v302_v56 = vmul.f32 %v689_v47, %v822_v0  ;;  %v286_v57 = vmul.f32 %v657_v48, %v822_v0  ;;  %vm355_vm7 = vcmp.gt.f32.partialorder %v323_v42, 0.0 }
  0x20   : > { %449 = vxpose.xlu0.b32.cont [2/16] %v417_v40, 128  ;;  %v340_v58 = vadd.f32 %v831_v9, %v301_v51  ;;  %v324_v59 = vadd.f32 %v831_v9, %v285_v52  ;;  %v303_v61 = vmul.f32 %v692_v49, %v822_v0  ;;  %v693_v62 = vunpack.c.h.bf16 %v720_v38  ;;  %v723_v52 = vld [vmem:[%s817_s19 + $0x70] sm:$0xff]  }
  0x21   : > { %v341_v60 = vadd.f32 %v831_v9, %v302_v56  ;;  %v435_v63 = vsel %vm371_vm6, %v339_v27, %v403_v50  ;;  %v287_v1 = vmul.f32 %v660_v53, %v822_v0  ;;  %v661_v2 = vunpack.c.h.bf16 %v712_v43  ;;  %v722_v27 = vld [vmem:[%s817_s19 + $0x68] sm:$0xff]   ;;  %v715_v53 = vld [vmem:[%s817_s19 + $0x30] sm:$0xff]  }
  0x22   : > { %v419_v3 = vsel %vm355_vm7, %v323_v42, %v387_v55  ;;  %v404_v4 = vmul.f32 0.1, %v340_v58  ;;  %v388_v5 = vmul.f32 0.1, %v324_v59  ;;  %v325_v6 = vadd.f32 %v831_v9, %v286_v57 }
  0x23   : > { %482 = vxpose.xlu1.b32.cont [3/16] %v434_v44, 128  ;;  %vm372_vm8 = vcmp.gt.f32.partialorder %v340_v58, 0.0  ;;  %vm356_vm9 = vcmp.gt.f32.partialorder %v324_v59, 0.0  ;;  %vm373_vm10 = vcmp.gt.f32.partialorder %v341_v60, 0.0  ;;  %v405_v10 = vmul.f32 0.1, %v341_v60 }
  0x24   : > { %450 = vxpose.xlu0.b32.cont [3/16] %v418_v54, 128  ;;  %v342_v11 = vadd.f32 %v831_v9, %v303_v61  ;;  %v304_v12 = vmul.f32 %v693_v62, %v822_v0  ;;  %v326_v13 = vadd.f32 %v831_v9, %v287_v1  ;;  %v288_v14 = vmul.f32 %v661_v2, %v822_v0 }
  0x25   : > { %v696_v15 = vunpack.c.l.bf16 %v721_v7  ;;  %v664_v16 = vunpack.c.l.bf16 %v713_v8  ;;  %v436_v17 = vsel %vm372_vm8, %v340_v58, %v404_v4  ;;  %v420_v18 = vsel %vm356_vm9, %v324_v59, %v388_v5 }
  0x26   : > { %v389_v19 = vmul.f32 0.1, %v325_v6  ;;  %vm357_vm11 = vcmp.gt.f32.partialorder %v325_v6, 0.0  ;;  %v437_v20 = vsel %vm373_vm10, %v341_v60, %v405_v10  ;;  %vm374_vm12 = vcmp.gt.f32.partialorder %v342_v11, 0.0 }
  0x27   : > { %483 = vxpose.xlu1.b32.cont [4/16] %v435_v63, 128  ;;  %v406_v21 = vmul.f32 0.1, %v342_v11  ;;  %v343_v22 = vadd.f32 %v831_v9, %v304_v12  ;;  %v390_v23 = vmul.f32 0.1, %v326_v13  ;;  %v327_v24 = vadd.f32 %v831_v9, %v288_v14 }
  0x28   : > { %451 = vxpose.xlu0.b32.cont [4/16] %v419_v3, 128  ;;  %v305_v25 = vmul.f32 %v696_v15, %v822_v0  ;;  %v289_v26 = vmul.f32 %v664_v16, %v822_v0  ;;  %v421_v28 = vsel %vm357_vm11, %v325_v6, %v389_v19  ;;  %vm358_vm13 = vcmp.gt.f32.partialorder %v326_v13, 0.0 }
  0x29   : > { %v697_v29 = vunpack.c.h.bf16 %v721_v7  ;;  %v665_v30 = vunpack.c.h.bf16 %v713_v8  ;;  %v438_v32 = vsel %vm374_vm12, %v342_v11, %v406_v21  ;;  %vm375_vm14 = vcmp.gt.f32.partialorder %v343_v22, 0.0  ;;  %v724_v7 = vld [vmem:[%s817_s19 + $0x78] sm:$0xff]  }
  0x2a   : > { %v407_v33 = vmul.f32 0.1, %v343_v22  ;;  %v700_v34 = vunpack.c.l.bf16 %v722_v27  ;;  %v422_v35 = vsel %vm358_vm13, %v326_v13, %v390_v23  ;;  %v391_v36 = vmul.f32 0.1, %v327_v24  ;;  %v716_v13 = vld [vmem:[%s817_s19 + $0x38] sm:$0xff]  }
  0x2b   : > { %484 = vxpose.xlu1.b32.cont [5/16] %v436_v17, 128  ;;  %v344_v37 = vadd.f32 %v831_v9, %v305_v25  ;;  %v328_v38 = vadd.f32 %v831_v9, %v289_v26  ;;  %vm359_vm15 = vcmp.gt.f32.partialorder %v327_v24, 0.0  ;;  %v306_v39 = vmul.f32 %v697_v29, %v822_v0 }
  0x2c   : > { %452 = vxpose.xlu0.b32.cont [5/16] %v420_v18, 128  ;;  %v290_v40 = vmul.f32 %v665_v30, %v822_v0  ;;  %v668_v41 = vunpack.c.l.bf16 %v714_v31  ;;  %v439_v42 = vsel %vm375_vm14, %v343_v22, %v407_v33  ;;  %v307_v43 = vmul.f32 %v700_v34, %v822_v0 }
  0x2d   : > { %v701_v44 = vunpack.c.h.bf16 %v722_v27  ;;  %v669_v45 = vunpack.c.h.bf16 %v714_v31  ;;  %v423_v46 = vsel %vm359_vm15, %v327_v24, %v391_v36  ;;  %vm376_vm0 = vcmp.gt.f32.partialorder %v344_v37, 0.0 }
  0x2e   : > { %v408_v47 = vmul.f32 0.1, %v344_v37  ;;  %v392_v48 = vmul.f32 0.1, %v328_v38  ;;  %vm360_vm1 = vcmp.gt.f32.partialorder %v328_v38, 0.0  ;;  %v345_v49 = vadd.f32 %v831_v9, %v306_v39 }
  0x2f   : > { %485 = vxpose.xlu1.b32.cont [6/16] %v437_v20, 128  ;;  %v329_v50 = vadd.f32 %v831_v9, %v290_v40  ;;  %v291_v51 = vmul.f32 %v668_v41, %v822_v0  ;;  %v308_v54 = vmul.f32 %v701_v44, %v822_v0  ;;  %v292_v55 = vmul.f32 %v669_v45, %v822_v0 }
  0x30   : > { %453 = vxpose.xlu0.b32.cont [6/16] %v421_v28, 128  ;;  %v440_v56 = vsel %vm376_vm0, %v344_v37, %v408_v47  ;;  %v424_v57 = vsel %vm360_vm1, %v328_v38, %v392_v48  ;;  %v346_v58 = vadd.f32 %v831_v9, %v307_v43  ;;  %v704_v59 = vunpack.c.l.bf16 %v723_v52 }
  0x31   : > { %v409_v60 = vmul.f32 0.1, %v345_v49  ;;  %v393_v61 = vmul.f32 0.1, %v329_v50  ;;  %v330_v62 = vadd.f32 %v831_v9, %v291_v51  ;;  %v672_v63 = vunpack.c.l.bf16 %v715_v53 }
  0x32   : > { %vm377_vm2 = vcmp.gt.f32.partialorder %v345_v49, 0.0  ;;  %vm361_vm3 = vcmp.gt.f32.partialorder %v329_v50, 0.0  ;;  %v347_v1 = vadd.f32 %v831_v9, %v308_v54  ;;  %v331_v2 = vadd.f32 %v831_v9, %v292_v55 }
  0x33   : > { %486 = vxpose.xlu1.b32.cont [7/16] %v438_v32, 128  ;;  %v410_v3 = vmul.f32 0.1, %v346_v58  ;;  %v309_v4 = vmul.f32 %v704_v59, %v822_v0  ;;  %v705_v5 = vunpack.c.h.bf16 %v723_v52  ;;  %v673_v6 = vunpack.c.h.bf16 %v715_v53 }
  0x34   : > { %454 = vxpose.xlu0.b32.cont [7/16] %v422_v35, 128  ;;  %v441_v8 = vsel %vm377_vm2, %v345_v49, %v409_v60  ;;  %v425_v10 = vsel %vm361_vm3, %v329_v50, %v393_v61  ;;  %v394_v11 = vmul.f32 0.1, %v330_v62  ;;  %v293_v12 = vmul.f32 %v672_v63, %v822_v0 }
  0x35   : > { %vm378_vm4 = vcmp.gt.f32.partialorder %v346_v58, 0.0  ;;  %vm362_vm5 = vcmp.gt.f32.partialorder %v330_v62, 0.0  ;;  %vm379_vm6 = vcmp.gt.f32.partialorder %v347_v1, 0.0  ;;  %v411_v14 = vmul.f32 0.1, %v347_v1 }
  0x36   : > { %v395_v15 = vmul.f32 0.1, %v331_v2  ;;  %v708_v16 = vunpack.c.l.bf16 %v724_v7  ;;  %vm363_vm7 = vcmp.gt.f32.partialorder %v331_v2, 0.0  ;;  %v348_v17 = vadd.f32 %v831_v9, %v309_v4 }
  0x37   : > { %487 = vxpose.xlu1.b32.cont [8/16] %v439_v42, 128  ;;  %v310_v18 = vmul.f32 %v705_v5, %v822_v0  ;;  %v294_v19 = vmul.f32 %v673_v6, %v822_v0  ;;  %v442_v20 = vsel %vm378_vm4, %v346_v58, %v410_v3  ;;  %v426_v21 = vsel %vm362_vm5, %v330_v62, %v394_v11 }
  0x38   : > { %455 = vxpose.xlu0.b32.cont [8/16] %v423_v46, 128  ;;  %v332_v22 = vadd.f32 %v831_v9, %v293_v12  ;;  %v676_v23 = vunpack.c.l.bf16 %v716_v13  ;;  %v443_v24 = vsel %vm379_vm6, %v347_v1, %v411_v14  ;;  %v427_v25 = vsel %vm363_vm7, %v331_v2, %v395_v15 }
  0x39   : > { %v311_v26 = vmul.f32 %v708_v16, %v822_v0  ;;  %vm380_vm8 = vcmp.gt.f32.partialorder %v348_v17, 0.0  ;;  %v412_v27 = vmul.f32 0.1, %v348_v17  ;;  %v349_v28 = vadd.f32 %v831_v9, %v310_v18 }
  0x3a   : > { %v333_v29 = vadd.f32 %v831_v9, %v294_v19  ;;  %v396_v30 = vmul.f32 0.1, %v332_v22  ;;  %v295_v31 = vmul.f32 %v676_v23, %v822_v0  ;;  %v709_v32 = vunpack.c.h.bf16 %v724_v7 }
  0x3b   : > { %488 = vxpose.xlu1.b32.cont [9/16] %v440_v56, 128  ;;  %v677_v33 = vunpack.c.h.bf16 %v716_v13  ;;  %vm364_vm9 = vcmp.gt.f32.partialorder %v332_v22, 0.0  ;;  %v350_v34 = vadd.f32 %v831_v9, %v311_v26  ;;  %v444_v35 = vsel %vm380_vm8, %v348_v17, %v412_v27 }
  0x3c   : > { %456 = vxpose.xlu0.b32.cont [9/16] %v424_v57, 128  ;;  %vm381_vm10 = vcmp.gt.f32.partialorder %v349_v28, 0.0  ;;  %v413_v36 = vmul.f32 0.1, %v349_v28  ;;  %v397_v37 = vmul.f32 0.1, %v333_v29  ;;  %v428_v38 = vsel %vm364_vm9, %v332_v22, %v396_v30 }
  0x3d   : > { %v334_v39 = vadd.f32 %v831_v9, %v295_v31  ;;  %v312_v40 = vmul.f32 %v709_v32, %v822_v0  ;;  %v296_v41 = vmul.f32 %v677_v33, %v822_v0  ;;  %vm365_vm11 = vcmp.gt.f32.partialorder %v333_v29, 0.0 }
  0x3e   : > { %v445_v42 = vsel %vm381_vm10, %v349_v28, %v413_v36  ;;  %v414_v43 = vmul.f32 0.1, %v350_v34  ;;  %v429_v44 = vsel %vm365_vm11, %v333_v29, %v397_v37  ;;  %vm382_vm12 = vcmp.gt.f32.partialorder %v350_v34, 0.0 }
  0x3f   : > { %489 = vxpose.xlu1.b32.cont [10/16] %v441_v8, 128  ;;  %v398_v45 = vmul.f32 0.1, %v334_v39  ;;  %v351_v46 = vadd.f32 %v831_v9, %v312_v40  ;;  %v335_v47 = vadd.f32 %v831_v9, %v296_v41  ;;  %vm366_vm13 = vcmp.gt.f32.partialorder %v334_v39, 0.0 }
  0x40   : > { %457 = vxpose.xlu0.b32.cont [10/16] %v425_v10, 128  ;;  %v446_v48 = vsel %vm382_vm12, %v350_v34, %v414_v43 }
  0x41   : > { %v430_v49 = vsel %vm366_vm13, %v334_v39, %v398_v45  ;;  %v415_v50 = vmul.f32 0.1, %v351_v46  ;;  %v399_v0 = vmul.f32 0.1, %v335_v47  ;;  %vm383_vm14 = vcmp.gt.f32.partialorder %v351_v46, 0.0 }
  0x42   : > { %vm367_vm15 = vcmp.gt.f32.partialorder %v335_v47, 0.0 }
  0x43   : > { %490 = vxpose.xlu1.b32.cont [11/16] %v442_v20, 128  ;;  %v447_v51 = vsel %vm383_vm14, %v351_v46, %v415_v50  ;;  %v431_v52 = vsel %vm367_vm15, %v335_v47, %v399_v0 }
  0x44   : > { %458 = vxpose.xlu0.b32.cont [11/16] %v426_v21, 128 }
  0x47   : > { %491 = vxpose.xlu1.b32.cont [12/16] %v443_v24, 128 }
  0x48   : > { %459 = vxpose.xlu0.b32.cont [12/16] %v427_v25, 128 }
  0x4b   : > { %492 = vxpose.xlu1.b32.cont [13/16] %v444_v35, 128 }
  0x4c   : > { %460 = vxpose.xlu0.b32.cont [13/16] %v428_v38, 128 }
  0x4f   : > { %493 = vxpose.xlu1.b32.cont [14/16] %v445_v42, 128 }
  0x50   : > { %461 = vxpose.xlu0.b32.cont [14/16] %v429_v44, 128 }
  0x53   : > { %494 = vxpose.xlu1.b32.cont [15/16] %v446_v48, 128 }
  0x54   : > { %462 = vxpose.xlu0.b32.cont [15/16] %v430_v49, 128 }
  0x57   : > { %495 = vxpose.xlu1.b32.end [16/16] %v447_v51, 128 }
  0x58   : > { %463 = vxpose.xlu0.b32.end [16/16] %v431_v52, 128 }
  0x9b   : > { %v496_v9 = vpop.trf.xlu1 }
  0x9c   : > { %v464_v53 = vpop.trf.xlu0  ;;  %513 = vst [vmem:[%s914_s27 + $0x8] sm:$0xff] %v496_v9 }
  0x9d   : > { %512 = vst [vmem:[%s914_s27] sm:$0xff] %v464_v53 }
  0x9f   : > { %v497_v54 = vpop.trf.xlu1 }
  0xa0   : > { %v465_v55 = vpop.trf.xlu0  ;;  %515 = vst [vmem:[%s914_s27 + $0x18] sm:$0xff] %v497_v54 }
  0xa1   : > { %514 = vst [vmem:[%s914_s27 + $0x10] sm:$0xff] %v465_v55 }
  0xa3   : > { %v498_v56 = vpop.trf.xlu1 }
  0xa4   : > { %v466_v57 = vpop.trf.xlu0  ;;  %517 = vst [vmem:[%s914_s27 + $0x28] sm:$0xff] %v498_v56 }
  0xa5   : > { %516 = vst [vmem:[%s914_s27 + $0x20] sm:$0xff] %v466_v57 }
  0xa7   : > { %v499_v58 = vpop.trf.xlu1 }
  0xa8   : > { %v467_v59 = vpop.trf.xlu0  ;;  %519 = vst [vmem:[%s914_s27 + $0x38] sm:$0xff] %v499_v58 }
  0xa9   : > { %518 = vst [vmem:[%s914_s27 + $0x30] sm:$0xff] %v467_v59 }
  0xab   : > { %v500_v60 = vpop.trf.xlu1 }
  0xac   : > { %v468_v61 = vpop.trf.xlu0  ;;  %521 = vst [vmem:[%s914_s27 + $0x48] sm:$0xff] %v500_v60 }
  0xad   : > { %520 = vst [vmem:[%s914_s27 + $0x40] sm:$0xff] %v468_v61 }
  0xaf   : > { %v501_v62 = vpop.trf.xlu1 }
  0xb0   : > { %v469_v63 = vpop.trf.xlu0  ;;  %523 = vst [vmem:[%s914_s27 + $0x58] sm:$0xff] %v501_v62 }
  0xb1   : > { %522 = vst [vmem:[%s914_s27 + $0x50] sm:$0xff] %v469_v63 }
  0xb3   : > { %v502_v1 = vpop.trf.xlu1 }
  0xb4   : > { %v470_v2 = vpop.trf.xlu0  ;;  %525 = vst [vmem:[%s914_s27 + $0x68] sm:$0xff] %v502_v1 }
  0xb5   : > { %524 = vst [vmem:[%s914_s27 + $0x60] sm:$0xff] %v470_v2 }
  0xb7   : > { %v503_v3 = vpop.trf.xlu1 }
  0xb8   : > { %v471_v4 = vpop.trf.xlu0  ;;  %527 = vst [vmem:[%s914_s27 + $0x78] sm:$0xff] %v503_v3 }
  0xb9   : > { %526 = vst [vmem:[%s914_s27 + $0x70] sm:$0xff] %v471_v4 }
  0xbb   : > { %v504_v5 = vpop.trf.xlu1 }
  0xbc   : > { %v472_v6 = vpop.trf.xlu0  ;;  %529 = vst [vmem:[%s914_s27 + $0x88] sm:$0xff] %v504_v5 }
  0xbd   : > { %528 = vst [vmem:[%s914_s27 + $0x80] sm:$0xff] %v472_v6 }
  0xbf   : > { %v505_v7 = vpop.trf.xlu1 }
  0xc0   : > { %v473_v8 = vpop.trf.xlu0  ;;  %531 = vst [vmem:[%s914_s27 + $0x98] sm:$0xff] %v505_v7 }
  0xc1   : > { %530 = vst [vmem:[%s914_s27 + $0x90] sm:$0xff] %v473_v8 }
  0xc3   : > { %v506_v10 = vpop.trf.xlu1 }
  0xc4   : > { %v474_v11 = vpop.trf.xlu0  ;;  %533 = vst [vmem:[%s914_s27 + $0xa8] sm:$0xff] %v506_v10 }
  0xc5   : > { %532 = vst [vmem:[%s914_s27 + $0xa0] sm:$0xff] %v474_v11 }
  0xc7   : > { %v507_v12 = vpop.trf.xlu1 }
  0xc8   : > { %v475_v13 = vpop.trf.xlu0  ;;  %535 = vst [vmem:[%s914_s27 + $0xb8] sm:$0xff] %v507_v12 }
  0xc9   : > { %534 = vst [vmem:[%s914_s27 + $0xb0] sm:$0xff] %v475_v13 }
  0xcb   : > { %v508_v14 = vpop.trf.xlu1 }
  0xcc   : > { %v476_v15 = vpop.trf.xlu0  ;;  %537 = vst [vmem:[%s914_s27 + $0xc8] sm:$0xff] %v508_v14 }
  0xcd   : > { %536 = vst [vmem:[%s914_s27 + $0xc0] sm:$0xff] %v476_v15 }
  0xcf   : > { %v509_v16 = vpop.trf.xlu1 }
  0xd0   : > { %v477_v17 = vpop.trf.xlu0  ;;  %539 = vst [vmem:[%s914_s27 + $0xd8] sm:$0xff] %v509_v16 }
  0xd1   : > { %538 = vst [vmem:[%s914_s27 + $0xd0] sm:$0xff] %v477_v17 }
  0xd3   : > { %v510_v18 = vpop.trf.xlu1 }
  0xd4   : > { %v478_v19 = vpop.trf.xlu0  ;;  %541 = vst [vmem:[%s914_s27 + $0xe8] sm:$0xff] %v510_v18 }
  0xd5   : > { %540 = vst [vmem:[%s914_s27 + $0xe0] sm:$0xff] %v478_v19 }
  0xd7   : > { %v511_v20 = vpop.trf.xlu1 }
  0xd8   : > { %v479_v21 = vpop.trf.xlu0  ;;  %543 = vst [vmem:[%s914_s27 + $0xf8] sm:$0xff] %v511_v20 }
  0xd9   : > { %542 = vst [vmem:[%s914_s27 + $0xf0] sm:$0xff] %v479_v21 }
  0xda PF: > { %s13_s14 = sadd.s32 1, %s771_s14   ;;  %s961_s12 = smov %s767_s13 }
  0xdb   : > { %p10_p5 = scmp.ge.s32.totalorder %s13_s14, 4   ;;  %s962_s13 = smov %s964_s15 }
  0xdd   :  { %12 = sbr.rel (!%p10_p5) target bundleno = 2 (0x2), region = 62 }

// kernel: cnn_block.2
= control target key start
LH: loop header
LB: loop body
LE: loop exit
PB: predicated region body
PF: predicated region fallthrough
CT: control target
= control target key end

     0   :  { %s1677_s15 = smov 0   ;;  %s1679_s16 = smov 0   ;;  %s1868_s0 = inlined_call_operand.vmem [shape: bf16[2,256,128], index: 0, kind: input, shape index: {}]   ;;  %s1869_s1 = inlined_call_operand.vmem [shape: bf16[128,128], index: 1, kind: input, shape index: {}]   ;;  %s1870_s2 = inlined_call_operand.vmem [shape: bf16[2,256,128], index: 2, kind: output, shape index: {0}]   ;;  %s1871_s3 = inlined_call_operand.vmem [shape: f32[2,1,8,128], index: 3, kind: output, shape index: {1}]   ;;  %s1872_s4 = inlined_call_operand.vmem [shape: f32[2,1,8,128], index: 4, kind: output, shape index: {2}]  }
   0x1   :  { %s1681_s17 = smov 0  }
   0x2 LB: > { %s34_s18 = sadd.s32 1, %s1646_s16  ;;  %p1298_p0 = scmp.ge.s32.totalorder %s1650_s17, 1  ;;  %s1650_s17 = sphi %s1681_s17, %s15_s17   ;;  %s1646_s16 = sphi %s1679_s16, %s1874_s16   ;;  %s1642_s15 = sphi %s1677_s15, %s1873_s15  }
   0x3   : > { %p36_p1 = scmp.ge.s32.totalorder %s34_s18, 2  ;;  %p215_p2 = scmp.lt.s32.totalorder %s1650_s17, 3 }
   0x5   : > { %s1876_s18 = smov (%p36_p1, %s34_s18), 0  ;;  %p216_p3 = pnand %p1298_p0, %p215_p2 }
   0x6   : > { %v1604_v0 = vld [vmem:[%s1869_s1] sm:$0xff] (!%p216_p3)   ;;  %p272_p4 = scmp.lt.s32.totalorder (!%p216_p3), %s1642_s15, 1  ;;  %v1605_v1 = vld [vmem:[%s1869_s1 + $0x8] sm:$0xff] (!%p216_p3)   ;;  %v1606_v2 = vld [vmem:[%s1869_s1 + $0x10] sm:$0xff] (!%p216_p3)  }
   0x7   : > { %219 = sbr.rel (%p216_p3) target bundleno = 331 (0x14b), region = 28  ;;  %1516 = vmatprep.subr.bf16.mxu0 (!%p216_p3), %v1604_v0  ;;  %1564 = vmatprep.subr.bf16.mxu1 (!%p216_p3), %v1604_v0  ;;  %v1607_v3 = vld [vmem:[%s1869_s1 + $0x18] sm:$0xff] (!%p216_p3)   ;;  %v1608_v5 = vld [vmem:[%s1869_s1 + $0x20] sm:$0xff] (!%p216_p3)   ;;  %v1609_v6 = vld [vmem:[%s1869_s1 + $0x28] sm:$0xff] (!%p216_p3)  }
   0x8   : > { %1517 = vmatpush3.bf16.msra.mxu0 (!%p216_p3), %v1604_v0  ;;  %1572 = vmatpush3.bf16.msra.mxu1 (!%p216_p3), %v1604_v0  ;;  %v1610_v8 = vld [vmem:[%s1869_s1 + $0x30] sm:$0xff] (!%p216_p3)   ;;  %v1611_v9 = vld [vmem:[%s1869_s1 + $0x38] sm:$0xff] (!%p216_p3)  }
   0x9   : > { %1518 = vmatprep.subr.bf16.mxu0 (!%p216_p3), %v1605_v1  ;;  %1565 = vmatprep.subr.bf16.mxu1 (!%p216_p3), %v1605_v1 }
   0xc   : > { %1519 = vmatpush3.bf16.msra.mxu0 (!%p216_p3), %v1605_v1  ;;  %1573 = vmatpush3.bf16.msra.mxu1 (!%p216_p3), %v1605_v1 }
   0xd   : > { %1520 = vmatprep.subr.bf16.mxu0 (!%p216_p3), %v1606_v2  ;;  %1566 = vmatprep.subr.bf16.mxu1 (!%p216_p3), %v1606_v2 }
   0xe   : > { %s1878_s15 = smov (!%p272_p4, %s1642_s15), 1 }
   0xf   : > { %s1363_s25 = sshll.u32 %s1878_s15, 7  ;;  %s1303_s20 = sshll.u32 %s1878_s15, 3 }
  0x10   : > { %s1712_s28 = scalar_lea.vmem %s1868_s0, %s1363_s25  ;;  %1521 = vmatpush3.bf16.msra.mxu0 %v1606_v2  ;;  %1574 = vmatpush3.bf16.msra.mxu1 %v1606_v2  ;;  %s1754_s19 = scalar_lea.vmem %s1870_s2, %s1363_s25 }
  0x11   : > { %v1612_v4 = vld [vmem:[%s1712_s28] sm:$0xff]   ;;  %1522 = vmatprep.subr.bf16.mxu0 %v1607_v3  ;;  %1567 = vmatprep.subr.bf16.mxu1 %v1607_v3  ;;  %v1613_v10 = vld [vmem:[%s1712_s28 + $0x8] sm:$0xff]   ;;  %v1614_v12 = vld [vmem:[%s1712_s28 + $0x10] sm:$0xff]   ;;  %s306_s23 = scalar_lea.vmem %s1871_s3, %s1303_s20  ;;  %s313_s26 = scalar_lea.vmem %s1872_s4, %s1303_s20 }
  0x12   : > { %1532 = vmatprep.mubr.bf16.mxu0 %v1612_v4  ;;  %v1620_v7 = vld [vmem:[%s1712_s28 + $0x40] sm:$0xff]   ;;  %v1621_v11 = vld [vmem:[%s1712_s28 + $0x48] sm:$0xff]   ;;  %v1622_v13 = vld [vmem:[%s1712_s28 + $0x50] sm:$0xff]  }
  0x13   : > { %1548 = vmatprep.mubr.bf16.mxu1 %v1620_v7  ;;  %v1615_v14 = vld [vmem:[%s1712_s28 + $0x18] sm:$0xff]   ;;  %v1616_v16 = vld [vmem:[%s1712_s28 + $0x20] sm:$0xff]   ;;  %v1617_v18 = vld [vmem:[%s1712_s28 + $0x28] sm:$0xff]  }
  0x14   : > { %1523 = vmatpush3.bf16.msra.mxu0 %v1607_v3  ;;  %1575 = vmatpush3.bf16.msra.mxu1 %v1607_v3  ;;  %v1623_v15 = vld [vmem:[%s1712_s28 + $0x58] sm:$0xff]   ;;  %v1624_v17 = vld [vmem:[%s1712_s28 + $0x60] sm:$0xff]   ;;  %v1625_v19 = vld [vmem:[%s1712_s28 + $0x68] sm:$0xff]  }
  0x15   : > { %1524 = vmatprep.subr.bf16.mxu0 %v1608_v5  ;;  %1568 = vmatprep.subr.bf16.mxu1 %v1608_v5  ;;  %v1618_v20 = vld [vmem:[%s1712_s28 + $0x30] sm:$0xff]   ;;  %v1619_v22 = vld [vmem:[%s1712_s28 + $0x38] sm:$0xff]  }
  0x16   : > { %v1626_v21 = vld [vmem:[%s1712_s28 + $0x70] sm:$0xff]   ;;  %v1627_v23 = vld [vmem:[%s1712_s28 + $0x78] sm:$0xff]  }
  0x18   : > { %1525 = vmatpush3.bf16.msra.mxu0 %v1608_v5  ;;  %1576 = vmatpush3.bf16.msra.mxu1 %v1608_v5 }
  0x19   : > { %1526 = vmatprep.subr.bf16.mxu0 %v1609_v6  ;;  %1569 = vmatprep.subr.bf16.mxu1 %v1609_v6 }
  0x1c   : > { %1527 = vmatpush3.bf16.msra.mxu0 %v1609_v6  ;;  %1577 = vmatpush3.bf16.msra.mxu1 %v1609_v6 }
  0x1d   : > { %1528 = vmatprep.subr.bf16.mxu0 %v1610_v8  ;;  %1570 = vmatprep.subr.bf16.mxu1 %v1610_v8 }
  0x20   : > { %1529 = vmatpush3.bf16.msra.mxu0 %v1610_v8  ;;  %1578 = vmatpush3.bf16.msra.mxu1 %v1610_v8 }
  0x21   : > { %1530 = vmatprep.subr.bf16.mxu0 %v1611_v9  ;;  %1571 = vmatprep.subr.bf16.mxu1 %v1611_v9 }
  0x24   : > { %1531 = vmatpush3.bf16.msra.mxu0 %v1611_v9  ;;  %1579 = vmatpush3.bf16.msra.mxu1 %v1611_v9 }
  0x27   : > { %1533 = vmatmul.mubr.bf16.vlgmr.msra.gmra.mrb[0].mxu0 %v1613_v10  ;;  %1549 = vmatmul.mubr.bf16.vlgmr.msra.gmra.mrb[0].mxu1 %v1621_v11 }
  0x28   : > { %1536 = vmatprep.mubr.bf16.mxu0 %v1614_v12  ;;  %1552 = vmatprep.mubr.bf16.mxu1 %v1622_v13 }
  0x2f   : > { %1537 = vmatmul.mubr.bf16.gmra.mrb[4].mxu0 %v1615_v14  ;;  %1553 = vmatmul.mubr.bf16.gmra.mrb[4].mxu1 %v1623_v15 }
  0x30   : > { %1540 = vmatprep.mubr.bf16.mxu0 %v1616_v16  ;;  %1556 = vmatprep.mubr.bf16.mxu1 %v1624_v17 }
  0x37   : > { %1541 = vmatmul.mubr.bf16.gmra.mrb[8].mxu0 %v1617_v18  ;;  %1557 = vmatmul.mubr.bf16.gmra.mrb[8].mxu1 %v1625_v19 }
  0x38   : > { %1544 = vmatprep.mubr.bf16.mxu0 %v1618_v20  ;;  %1560 = vmatprep.mubr.bf16.mxu1 %v1626_v21 }
  0x3f   : > { %1545 = vmatmul.mubr.bf16.gmra.mrb[12].mxu0 %v1619_v22  ;;  %1561 = vmatmul.mubr.bf16.gmra.mrb[12].mxu1 %v1627_v23 }
  0xfa   : > { %v1534_v24 = vpop.f32.mrb[0].mxu0  ;;  %v1745_v25 = vpop.f32.mrb[0].mxu1 }
  0xfb   : > { %v609_v26 = vpop.f32.mrb[1].mxu0  ;;  %v1747_v27 = vpop.f32.mrb[1].mxu1  ;;  %v1034_v39 = vmul.f32 %v1534_v24, %v1534_v24 }
  0xfc   : > { %v1535_v28 = vpop.f32.mrb[2].mxu0  ;;  %v1756_v29 = vpop.f32.mrb[2].mxu1  ;;  %v1032_v30 = vmul.f32 %v609_v26, %v609_v26 }
  0xfd   : > { %v1405_v31 = vpack.c.bf16 %v1535_v28, %v1534_v24  ;;  %v612_v32 = vpop.f32.mrb[3].mxu0  ;;  %v1445_v33 = vpack.c.bf16 %v1756_v29, %v1745_v25  ;;  %v1760_v34 = vpop.f32.mrb[3].mxu1  ;;  %v1035_v42 = vmul.f32 %v1535_v28, %v1535_v28 }
  0xfe   : > { %v1400_v35 = vpack.c.bf16 %v612_v32, %v609_v26  ;;  %v995_v36 = vadd.f32 %v612_v32, %v609_v26  ;;  %v1033_v37 = vmul.f32 %v612_v32, %v612_v32  ;;  %v1440_v38 = vpack.c.bf16 %v1760_v34, %v1747_v27 }
  0xff   : > { %1477 = vst [vmem:[%s1754_s19 + $0x8] sm:$0xff] %v1405_v31   ;;  %1485 = vst [vmem:[%s1754_s19 + $0x48] sm:$0xff] %v1445_v33  }
 0x100   : > { %1401 = vst [vmem:[%s1754_s19] sm:$0xff] %v1400_v35   ;;  %v996_v40 = vadd.f32 %v1534_v24, %v995_v36  ;;  %v1064_v41 = vadd.f32 %v1033_v37, %v1032_v30  ;;  %1484 = vst [vmem:[%s1754_s19 + $0x40] sm:$0xff] %v1440_v38  }
 0x102   : > { %v1065_v43 = vadd.f32 %v1064_v41, %v1034_v39  ;;  %v1538_v44 = vpop.f32.mrb[4].mxu0  ;;  %v997_v45 = vadd.f32 %v1535_v28, %v996_v40  ;;  %v1768_v46 = vpop.f32.mrb[4].mxu1 }
 0x103   : > { %v625_v47 = vpop.f32.mrb[5].mxu0  ;;  %v1770_v48 = vpop.f32.mrb[5].mxu1  ;;  %v1038_v63 = vmul.f32 %v1538_v44, %v1538_v44 }
 0x104   : > { %v998_v49 = vadd.f32 %v997_v45, %v625_v47  ;;  %v1036_v50 = vmul.f32 %v625_v47, %v625_v47  ;;  %v1066_v51 = vadd.f32 %v1065_v43, %v1035_v42  ;;  %v1539_v52 = vpop.f32.mrb[6].mxu0  ;;  %v1772_v53 = vpop.f32.mrb[6].mxu1 }
 0x105   : > { %v1415_v54 = vpack.c.bf16 %v1539_v52, %v1538_v44  ;;  %v628_v55 = vpop.f32.mrb[7].mxu0  ;;  %v1455_v56 = vpack.c.bf16 %v1772_v53, %v1768_v46  ;;  %v1776_v57 = vpop.f32.mrb[7].mxu1  ;;  %v1039_v2 = vmul.f32 %v1539_v52, %v1539_v52 }
 0x106   : > { %v1067_v58 = vadd.f32 %v1066_v51, %v1036_v50  ;;  %v1410_v59 = vpack.c.bf16 %v628_v55, %v625_v47  ;;  %v999_v60 = vadd.f32 %v998_v49, %v628_v55  ;;  %v1037_v61 = vmul.f32 %v628_v55, %v628_v55 }
 0x107   : > { %1479 = vst [vmem:[%s1754_s19 + $0x18] sm:$0xff] %v1415_v54   ;;  %1487 = vst [vmem:[%s1754_s19 + $0x58] sm:$0xff] %v1455_v56   ;;  %v1450_v62 = vpack.c.bf16 %v1776_v57, %v1770_v48 }
 0x108   : > { %1478 = vst [vmem:[%s1754_s19 + $0x10] sm:$0xff] %v1410_v59   ;;  %v1000_v0 = vadd.f32 %v1538_v44, %v999_v60  ;;  %v1068_v1 = vadd.f32 %v1067_v58, %v1037_v61  ;;  %v1048_v61 = vmul.f32 %v1747_v27, %v1747_v27 }
 0x109   : > { %1486 = vst [vmem:[%s1754_s19 + $0x50] sm:$0xff] %v1450_v62  }
 0x10a   : > { %v1069_v3 = vadd.f32 %v1068_v1, %v1038_v63  ;;  %v1542_v4 = vpop.f32.mrb[8].mxu0  ;;  %v1001_v5 = vadd.f32 %v1539_v52, %v1000_v0  ;;  %v1784_v6 = vpop.f32.mrb[8].mxu1 }
 0x10b   : > { %v641_v7 = vpop.f32.mrb[9].mxu0  ;;  %v1786_v8 = vpop.f32.mrb[9].mxu1  ;;  %v1042_v23 = vmul.f32 %v1542_v4, %v1542_v4 }
 0x10c   : > { %v1002_v9 = vadd.f32 %v1001_v5, %v641_v7  ;;  %v1040_v10 = vmul.f32 %v641_v7, %v641_v7  ;;  %v1070_v11 = vadd.f32 %v1069_v3, %v1039_v2  ;;  %v1543_v12 = vpop.f32.mrb[10].mxu0  ;;  %v1788_v13 = vpop.f32.mrb[10].mxu1  ;;  %v1049_v2 = vmul.f32 %v1760_v34, %v1760_v34 }
 0x10d   : > { %v1425_v14 = vpack.c.bf16 %v1543_v12, %v1542_v4  ;;  %v644_v15 = vpop.f32.mrb[11].mxu0  ;;  %v1465_v16 = vpack.c.bf16 %v1788_v13, %v1784_v6  ;;  %v1792_v17 = vpop.f32.mrb[11].mxu1  ;;  %v1043_v28 = vmul.f32 %v1543_v12, %v1543_v12  ;;  %v1050_v3 = vmul.f32 %v1745_v25, %v1745_v25 }
 0x10e   : > { %v1071_v18 = vadd.f32 %v1070_v11, %v1040_v10  ;;  %v1420_v19 = vpack.c.bf16 %v644_v15, %v641_v7  ;;  %v1003_v20 = vadd.f32 %v1002_v9, %v644_v15  ;;  %v1041_v21 = vmul.f32 %v644_v15, %v644_v15 }
 0x10f   : > { %1481 = vst [vmem:[%s1754_s19 + $0x28] sm:$0xff] %v1425_v14   ;;  %1489 = vst [vmem:[%s1754_s19 + $0x68] sm:$0xff] %v1465_v16   ;;  %v1460_v22 = vpack.c.bf16 %v1792_v17, %v1786_v8  ;;  %v1051_v7 = vmul.f32 %v1756_v29, %v1756_v29  ;;  %v1053_v15 = vmul.f32 %v1776_v57, %v1776_v57 }
 0x110   : > { %1480 = vst [vmem:[%s1754_s19 + $0x20] sm:$0xff] %v1420_v19   ;;  %v1004_v24 = vadd.f32 %v1542_v4, %v1003_v20  ;;  %v1072_v26 = vadd.f32 %v1071_v18, %v1041_v21 }
 0x111   : > { %1488 = vst [vmem:[%s1754_s19 + $0x60] sm:$0xff] %v1460_v22  }
 0x112   : > { %v1073_v30 = vadd.f32 %v1072_v26, %v1042_v23  ;;  %v1546_v31 = vpop.f32.mrb[12].mxu0  ;;  %v1005_v32 = vadd.f32 %v1543_v12, %v1004_v24  ;;  %v1800_v33 = vpop.f32.mrb[12].mxu1  ;;  %v1057_v24 = vmul.f32 %v1792_v17, %v1792_v17 }
 0x113   : > { %v657_v35 = vpop.f32.mrb[13].mxu0  ;;  %v721_v36 = vpop.f32.mrb[13].mxu1  ;;  %v1046_v54 = vmul.f32 %v1546_v31, %v1546_v31 }
 0x114   : > { %v1006_v37 = vadd.f32 %v1005_v32, %v657_v35  ;;  %v1044_v38 = vmul.f32 %v657_v35, %v657_v35  ;;  %v1074_v39 = vadd.f32 %v1073_v30, %v1043_v28  ;;  %v1547_v40 = vpop.f32.mrb[14].mxu0  ;;  %v1802_v41 = vpop.f32.mrb[14].mxu1 }
 0x115   : > { %v1435_v42 = vpack.c.bf16 %v1547_v40, %v1546_v31  ;;  %v660_v43 = vpop.f32.mrb[15].mxu0  ;;  %v1475_v44 = vpack.c.bf16 %v1802_v41, %v1800_v33  ;;  %v724_v45 = vpop.f32.mrb[15].mxu1  ;;  %v1047_v58 = vmul.f32 %v1547_v40, %v1547_v40 }
 0x116   : > { %v1075_v47 = vadd.f32 %v1074_v39, %v1044_v38  ;;  %v1430_v49 = vpack.c.bf16 %v660_v43, %v657_v35  ;;  %v1007_v50 = vadd.f32 %v1006_v37, %v660_v43  ;;  %v1045_v51 = vmul.f32 %v660_v43, %v660_v43 }
 0x117   : > { %1483 = vst [vmem:[%s1754_s19 + $0x38] sm:$0xff] %v1435_v42   ;;  %1491 = vst [vmem:[%s1754_s19 + $0x78] sm:$0xff] %v1475_v44   ;;  %v1470_v52 = vpack.c.bf16 %v724_v45, %v721_v36  ;;  %v1061_v39 = vmul.f32 %v724_v45, %v724_v45  ;;  %v1063_v42 = vmul.f32 %v1802_v41, %v1802_v41 }
 0x118   : > { %1482 = vst [vmem:[%s1754_s19 + $0x30] sm:$0xff] %v1430_v49   ;;  %v1008_v55 = vadd.f32 %v1546_v31, %v1007_v50  ;;  %v1076_v56 = vadd.f32 %v1075_v47, %v1045_v51 }
 0x119   : > { %1490 = vst [vmem:[%s1754_s19 + $0x70] sm:$0xff] %v1470_v52  }
 0x11a   : > { %v1077_v59 = vadd.f32 %v1076_v56, %v1046_v54  ;;  %v1009_v60 = vadd.f32 %v1547_v40, %v1008_v55 }
 0x11c   : > { %v1010_v62 = vadd.f32 %v1009_v60, %v1747_v27  ;;  %v1078_v63 = vadd.f32 %v1077_v59, %v1047_v58  ;;  %v1052_v27 = vmul.f32 %v1770_v48, %v1770_v48 }
 0x11e   : > { %v1079_v0 = vadd.f32 %v1078_v63, %v1048_v61  ;;  %v1011_v1 = vadd.f32 %v1010_v62, %v1760_v34 }
 0x120   : > { %v1012_v4 = vadd.f32 %v1745_v25, %v1011_v1  ;;  %v1080_v5 = vadd.f32 %v1079_v0, %v1049_v2  ;;  %v1054_v25 = vmul.f32 %v1768_v46, %v1768_v46 }
 0x122   : > { %v1081_v9 = vadd.f32 %v1080_v5, %v1050_v3  ;;  %v1013_v10 = vadd.f32 %v1756_v29, %v1012_v4  ;;  %v1055_v29 = vmul.f32 %v1772_v53, %v1772_v53 }
 0x124   : > { %v1014_v11 = vadd.f32 %v1013_v10, %v1770_v48  ;;  %v1082_v12 = vadd.f32 %v1081_v9, %v1051_v7  ;;  %v1056_v48 = vmul.f32 %v1786_v8, %v1786_v8 }
 0x126   : > { %v1083_v14 = vadd.f32 %v1082_v12, %v1052_v27  ;;  %v1015_v34 = vadd.f32 %v1014_v11, %v1776_v57 }
 0x128   : > { %v1016_v16 = vadd.f32 %v1768_v46, %v1015_v34  ;;  %v1084_v18 = vadd.f32 %v1083_v14, %v1053_v15  ;;  %v1058_v46 = vmul.f32 %v1784_v6, %v1784_v6 }
 0x12a   : > { %v1085_v19 = vadd.f32 %v1084_v18, %v1054_v25  ;;  %v1017_v20 = vadd.f32 %v1772_v53, %v1016_v16  ;;  %v1059_v53 = vmul.f32 %v1788_v13, %v1788_v13 }
 0x12c   : > { %v1018_v21 = vadd.f32 %v1017_v20, %v1786_v8  ;;  %v1086_v22 = vadd.f32 %v1085_v19, %v1055_v29  ;;  %v1060_v8 = vmul.f32 %v721_v36, %v721_v36 }
 0x12e   : > { %v1087_v23 = vadd.f32 %v1086_v22, %v1056_v48  ;;  %v1019_v57 = vadd.f32 %v1018_v21, %v1792_v17  ;;  %v1062_v17 = vmul.f32 %v1800_v33, %v1800_v33 }
 0x130   : > { %v1020_v26 = vadd.f32 %v1784_v6, %v1019_v57  ;;  %v1088_v28 = vadd.f32 %v1087_v23, %v1057_v24 }
 0x132   : > { %v1089_v30 = vadd.f32 %v1088_v28, %v1058_v46  ;;  %v1021_v31 = vadd.f32 %v1788_v13, %v1020_v26 }
 0x134   : > { %v1022_v32 = vadd.f32 %v1021_v31, %v721_v36  ;;  %v1090_v35 = vadd.f32 %v1089_v30, %v1059_v53 }
 0x136   : > { %v1091_v37 = vadd.f32 %v1090_v35, %v1060_v8  ;;  %v1023_v38 = vadd.f32 %v1022_v32, %v724_v45 }
 0x138   : > { %v1024_v40 = vadd.f32 %v1800_v33, %v1023_v38  ;;  %v1092_v6 = vadd.f32 %v1091_v37, %v1061_v39 }
 0x13a   : > { %v1025_v43 = vadd.f32 %v1802_v41, %v1024_v40  ;;  %v1093_v44 = vadd.f32 %v1092_v6, %v1062_v17 }
 0x13c   : > { %v1026_v13 = vrot.slane %v1025_v43, 4  ;;  %v1094_v47 = vadd.f32 %v1093_v44, %v1063_v42 }
 0x13e   : > { %v1027_v36 = vadd.f32 %v1026_v13, %v1025_v43  ;;  %v1095_v49 = vrot.slane %v1094_v47, 4 }
 0x140   : > { %v1028_v50 = vrot.slane %v1027_v36, 2  ;;  %v1096_v51 = vadd.f32 %v1095_v49, %v1094_v47 }
 0x142   : > { %v1029_v45 = vadd.f32 %v1028_v50, %v1027_v36  ;;  %v1097_v52 = vrot.slane %v1096_v51, 2 }
 0x144   : > { %v1030_v54 = vrot.slane %v1029_v45, 1  ;;  %v1098_v55 = vadd.f32 %v1097_v52, %v1096_v51 }
 0x146   : > { %v1031_v33 = vadd.f32 %v1030_v54, %v1029_v45  ;;  %v1099_v56 = vrot.slane %v1098_v55, 1 }
 0x148   : > { %v1100_v41 = vadd.f32 %v1099_v56, %v1098_v55  ;;  %1101 = vst [vmem:[%s306_s23] sm:$0xff] %v1031_v33 }
 0x14a   : > { %1102 = vst [vmem:[%s313_s26] sm:$0xff] %v1100_v41 }
 0x14b PF: > { %s15_s17 = sadd.s32 1, %s1650_s17   ;;  %s1873_s15 = smov %s1646_s16 }
 0x14c   : > { %p12_p5 = scmp.ge.s32.totalorder %s15_s17, 4   ;;  %s1874_s16 = smov %s1876_s18 }
 0x14e   :  { %14 = sbr.rel (!%p12_p5) target bundleno = 2 (0x2), region = 93 }

</bundles_post_ra>
